<compile_context>
chip_gen: v6e
topology: v6e:2x2x1
jax: 0.10.0
libtpu: 0.0.40
codegen_flags: <defaults>
</compile_context>

<pallas_src>
import jax
import jax.numpy as jnp
from jax.experimental import pallas as pl
from jax.experimental.pallas import tpu as pltpu

INITIAL_LOGITS_VALUE = 3.0

_LANES = 128              # vreg lane count (fast axis)
_SUBLANES = 8             # f32 sublane tiling
_SINGLE_BLOCK_MAX = 64 * 1024   # <= 64K elements: single full-array block, no grid machinery
_MAX_TILE_ROWS = 4096           # 4096 x 128 f32 = 2 MiB per tile (8 MiB with in+out double-buffering)


def _sigmoid_kernel(x_ref, p_ref):
    """Elementwise logistic on a VMEM tile.

    sigmoid(x) == 0.5 * (tanh(x / 2) + 1): one EUP push per element, no exact
    divide (review item: keeps EUP/VALU slots off the critical path on v7x).
    """
    x = x_ref[...].astype(jnp.float32)
    p_ref[...] = (0.5 * (jnp.tanh(0.5 * x) + 1.0)).astype(p_ref.dtype)


def _round_up(n: int, m: int) -> int:
    return ((n + m - 1) // m) * m


def orbit_raw_logits(logits_param: jax.Array):
    """Runs forward() and probs() of OrbitRawLogits.

    forward() is an identity on the parameter and is returned directly (no kernel).
    probs() = sigmoid(parameter) is computed by a Pallas TPU kernel.

    Args:
      logits_param: array of shape (1, num_logits, 1, 1).
    Returns:
      (forward_out, probs_out), each of shape (1, num_logits, 1, 1).
    """
    assert logits_param.ndim == 4 and logits_param.shape[0] == 1
    num_logits = logits_param.shape[1]
    dtype = logits_param.dtype
    itemsize = jnp.dtype(dtype).itemsize

    # forward(): identity on the parameter the caller already holds.
    fwd = logits_param

    if num_logits <= _SINGLE_BLOCK_MAX:
        # ---- common / small-N path -------------------------------------------
        # Dropping the degenerate trailing dims does not change the HBM layout,
        # so this reshape is free.  One pallas_call, whole array as one block:
        # no grid, no pad, no output slice.
        x2d = logits_param.reshape(1, num_logits)
        probs2d = pl.pallas_call(
            _sigmoid_kernel,
            out_shape=jax.ShapeDtypeStruct((1, num_logits), dtype),
            cost_estimate=pl.CostEstimate(
                flops=3 * num_logits,
                transcendentals=num_logits,
                bytes_accessed=2 * itemsize * num_logits,
            ),
        )(x2d)
        return fwd, probs2d.reshape(logits_param.shape)

    # ---- large-N path: lane-dense (rows, 128) slab, tiled "parallel" grid -----
    # TODO(synk): in production the parameter should be stored in this 2-D layout
    # persistently (reshape once at init) so this one-time relayout copy vanishes.
    rows = pl.cdiv(num_logits, _LANES)
    padded = rows * _LANES
    flat = logits_param.reshape(-1)
    if padded != num_logits:
        flat = jnp.pad(flat, (0, padded - num_logits))   # < 128 pad elements (rare, ragged N)
    x2d = flat.reshape(rows, _LANES)

    # Tiles up to 4096 rows (2 MiB f32), but always >= 2 grid steps so a v7x
    # megacore can split the "parallel" axis across its two TensorCores.
    tile_rows = min(_MAX_TILE_ROWS, _round_up(pl.cdiv(rows, 2), _SUBLANES))
    grid = (pl.cdiv(rows, tile_rows),)   # ragged last block is masked by Pallas

    probs2d = pl.pallas_call(
        _sigmoid_kernel,
        out_shape=jax.ShapeDtypeStruct((rows, _LANES), dtype),
        grid=grid,
        in_specs=[pl.BlockSpec((tile_rows, _LANES), lambda i: (i, 0))],
        out_specs=pl.BlockSpec((tile_rows, _LANES), lambda i: (i, 0)),
        compiler_params=pltpu.CompilerParams(
            dimension_semantics=("parallel",),
        ),
        cost_estimate=pl.CostEstimate(
            flops=3 * padded,
            transcendentals=padded,
            bytes_accessed=2 * itemsize * padded,
        ),
    )(x2d)

    probs = probs2d.reshape(-1)
    if padded != num_logits:
        probs = probs[:num_logits]
    return fwd, probs.reshape(logits_param.shape)


def make_orbit_raw_logits_params(num_logits: int, dtype=jnp.float32) -> jax.Array:
    # torch.nn.init.constant_(logits, 3.0) -> deterministic constant init.
    return jnp.full((1, num_logits, 1, 1), INITIAL_LOGITS_VALUE, dtype=dtype)


if __name__ == "__main__":
    num_logits = 32
    key = jax.random.PRNGKey(0)  # module init is constant; key used for an extra value check

    # 1) Module-faithful case: constant-initialized parameter, num_logits = 32.
    logits_param = make_orbit_raw_logits_params(num_logits)
    fwd_out, probs_out = orbit_raw_logits(logits_param)
    fwd_out = jax.block_until_ready(fwd_out)
    probs_out = jax.block_until_ready(probs_out)

    assert fwd_out.shape == (1, num_logits, 1, 1)
    assert probs_out.shape == (1, num_logits, 1, 1)
    assert jnp.allclose(fwd_out, logits_param)
    assert jnp.allclose(probs_out, jax.nn.sigmoid(logits_param), atol=2e-6, rtol=1e-5)

    # 2) Same small shape, random logit values, to check the sigmoid itself.
    rand_logits = jax.random.normal(key, (1, num_logits, 1, 1), dtype=jnp.float32) * 4.0
    _, rand_probs = orbit_raw_logits(rand_logits)
    rand_probs = jax.block_until_ready(rand_probs)
    assert jnp.allclose(rand_probs, jax.nn.sigmoid(rand_logits), atol=2e-6, rtol=1e-5)

    # 3) Exercise the tiled large-N path once (still tiny data: ~280 KiB).
    big_n = 70_000   # > _SINGLE_BLOCK_MAX and not a multiple of 128 -> ragged tail
    big_param = make_orbit_raw_logits_params(big_n)
    _, big_probs = orbit_raw_logits(big_param)
    big_probs = jax.block_until_ready(big_probs)
    assert big_probs.shape == (1, big_n, 1, 1)
    assert jnp.allclose(big_probs, jax.nn.sigmoid(big_param), atol=2e-6, rtol=1e-5)

    print("KERNEL_OK")
</pallas_src>

<mosaic_0001>
module attributes {stable_mosaic.version = 11 : i64} {
  func.func @_sigmoid_kernel(%arg0: memref<1x32xf32, #tpu.memory_space<vmem>>, %arg1: memref<1x32xf32, #tpu.memory_space<vmem>>) attributes {dimension_semantics = [], scalar_prefetch = 0 : i64, scratch_operands = 0 : i64, tpu.core_type = #tpu.core_type<tc>} {
    %c0 = arith.constant 0 : index
    %c0_0 = arith.constant 0 : index
    %0 = vector.load %arg0[%c0, %c0_0] : memref<1x32xf32, #tpu.memory_space<vmem>>, vector<1x32xf32>
    %cst = arith.constant 5.000000e-01 : f32
    %1 = vector.broadcast %cst : f32 to vector<1x32xf32>
    %2 = arith.mulf %1, %0 : vector<1x32xf32>
    %3 = math.tanh %2 : vector<1x32xf32>
    %cst_1 = arith.constant 1.000000e+00 : f32
    %4 = vector.broadcast %cst_1 : f32 to vector<1x32xf32>
    %5 = arith.addf %3, %4 : vector<1x32xf32>
    %cst_2 = arith.constant 5.000000e-01 : f32
    %6 = vector.broadcast %cst_2 : f32 to vector<1x32xf32>
    %7 = arith.mulf %6, %5 : vector<1x32xf32>
    %c0_3 = arith.constant 0 : index
    %c0_4 = arith.constant 0 : index
    %8 = vector.load %arg1[%c0_3, %c0_4] : memref<1x32xf32, #tpu.memory_space<vmem>>, vector<1x32xf32>
    tpu.vector_store %arg1[%c0_3, %c0_4], %7 {strides = array<i32>} : memref<1x32xf32, #tpu.memory_space<vmem>>, vector<1x32xf32>,
    return
  }
}

</mosaic_0001>

<bundles_post_ra>
// kernel: tpu_custom_call.1
= control target key start
LH: loop header
LB: loop body
LE: loop exit
PB: predicated region body
PF: predicated region fallthrough
CT: control target
= control target key end

     0   :  { %6 = vsyncpa [#allocation3], 0  ;;  %s109_s0 = inlined_call_operand.hbm [shape: f32[1,32], index: 0, kind: input, shape index: {}]   ;;  %s110_s1 = inlined_call_operand.hbm [shape: f32[1,32], index: 1, kind: output, shape index: {}]  }
   0x1   :  { %7 = vsyncpa [#allocation4], 0  ;;  %s91_s6 = smov [#allocation2]  }
   0x2   :  { %s14_s7 = sshll.u32 %s91_s6, 4  ;;  %s15_s7 = int_to_ptr.vmem [resolvable:$true] %s14_s7 }
   0x3   :  { %s55_s8 = scalar_lea.vmem %s15_s7, 16  ;;  %s59_s9 = scalar_lea.vmem %s15_s7, 32 }
   0x4   :  { %p56_p0 = scmp.ne.s32.totalorder %s15_s7, %s55_s8  ;;  %p60_p1 = scmp.lt.s32.totalorder %s15_s7, %s15_s7 }
   0x5   :  { %p61_p2 = scmp.lt.s32.totalorder %s59_s9, %s55_s8 }
   0x7   :  { %p62_p3 = por %p61_p2, %p60_p1 }
   0x9   :  { %p63_p4 = pnand %p62_p3, %p56_p0 }
   0xb   :  { %66 = shalt.err (!%p63_p4)
}
   0xc   :  { %17 = dma.hbm_to_vmem [thread:$0]  %s109_s0, 16, %s15_s7, [#allocation3]  }
   0xd   :  { %87 = dma.done.wait [#allocation3], 16  }
   0xe   :  { %88 = vsyncadd [#allocation3], 4294967280  ;;  %v21_v0 = vld [vmem:[#allocation2] sm:$0x1]  ;;  %s92_s12 = smov [#allocation5]   ;;  %vm26_vm0 = vcmask 253952  }
   0xf   :  { %v22_v1 = vmul.f32 0.5, %v21_v0  ;;  %s34_s13 = sshll.u32 %s92_s12, 4  ;;  %s35_s13 = int_to_ptr.vmem [resolvable:$true] %s34_s13 }
  0x10   :  { %s67_s14 = scalar_lea.vmem %s35_s13, 16  ;;  %s71_s15 = scalar_lea.vmem %s35_s13, 32 }
  0x11   :  { %45 = vtanh.f32 %v22_v1  ;;  %p68_p5 = scmp.ne.s32.totalorder %s35_s13, %s67_s14  ;;  %p72_p6 = scmp.lt.s32.totalorder %s35_s13, %s35_s13 }
  0x12   :  { %p73_p7 = scmp.lt.s32.totalorder %s71_s15, %s67_s14 }
  0x14   :  { %p74_p8 = por %p73_p7, %p72_p6 }
  0x16   :  { %p75_p9 = pnand %p74_p8, %p68_p5 }
  0x1e   :  { %v46_v2 = vpop.eup %45 }
  0x1f   :  { %v24_v3 = vadd.f32 1.0, %v46_v2 }
  0x21   :  { %v25_v4 = vmul.f32 0.5, %v24_v3 }
  0x23   :  { %27 = vst.msk [vmem:[#allocation5] sm:$0x1] %vm26_vm0, %v25_v4 }
  0x24   :  { %78 = shalt.err (!%p75_p9)
}
  0x25   :  { %37 = dma.vmem_to_hbm [thread:$0]  %s35_s13, 16, %s110_s1, [#allocation4]  }
  0x26   :  { %89 = dma.done.wait [#allocation4], 16  }
  0x27   :  { %90 = vsyncadd [#allocation4], 4294967280 }
  0x28   :  { %41 = vsyncpa [#allocation3], 1 }
  0x29   :  { %42 = vsyncpa [#allocation4], 1 }

</bundles_post_ra>
